<compile_context>
chip_gen: v6e
topology: v6e:2x2x1
jax: 0.10.0
libtpu: 0.0.40
codegen_flags: <defaults>
</compile_context>

<pallas_src>
import functools
import math

import jax
import jax.numpy as jnp
from jax.experimental import pallas as pl
from jax.experimental.pallas import tpu as pltpu

_LANE = 512        # lane-dense width (multiple of 128)
_MAX_ROWS = 512    # row tile: 512x512 f32 = 1 MiB per buffer


def _round_up(x: int, m: int) -> int:
    return (x + m - 1) // m * m


# --------------------------------------------------------------------------
# TPU path: fused hardware-PRNG + paired Box-Muller + add, one VMEM pass.
# --------------------------------------------------------------------------
def _tpu_noise_kernel(seed_ref, x_ref, o_ref, *, mean, std):
    # Per-tile seed: deterministic per (seed, tile), independent across tiles.
    pltpu.prng_seed(seed_ref[0] + pl.program_id(0))

    tm, lane = x_ref.shape
    half = lane // 2

    # Single PRNG draw for the whole tile; lanes [0:half) -> u1, [half:) -> u2.
    bits = pltpu.bitcast(pltpu.prng_random_bits((tm, lane)), jnp.uint32)
    # 23 random mantissa bits, exponent of 1.0 -> [1, 2), minus 1 -> [0, 1).
    mant = (bits >> jnp.uint32(9)) | jnp.uint32(0x3F800000)
    u = pltpu.bitcast(mant, jnp.float32) - 1.0

    u1 = 1.0 - u[:, :half]                      # (0, 1] -> log() is safe
    u2 = u[:, half:]                            # [0, 1)

    # Paired Box-Muller: one (u1, u2) pair -> two independent N(0, std^2).
    r = jnp.sqrt(jnp.float32(-2.0) * jnp.log(u1)) * jnp.float32(std)
    theta = jnp.float32(2.0 * math.pi) * u2
    z0 = r * jnp.cos(theta)
    z1 = r * jnp.sin(theta)

    y0 = x_ref[:, :half] + z0
    y1 = x_ref[:, half:] + z1
    if mean != 0.0:
        y0 = y0 + jnp.float32(mean)
        y1 = y1 + jnp.float32(mean)

    # Two 256-lane stores: both lane offsets are multiples of 128 -> unmasked.
    o_ref[:, :half] = y0.astype(o_ref.dtype)
    o_ref[:, half:] = y1.astype(o_ref.dtype)


def _add_gaussian_noise_tpu(x2, seed: int, mean: float, std: float, tm: int):
    m, lane = x2.shape
    kernel = functools.partial(_tpu_noise_kernel, mean=float(mean), std=float(std))
    seed_arr = jnp.asarray([seed], dtype=jnp.int32)
    return pl.pallas_call(
        kernel,
        out_shape=jax.ShapeDtypeStruct(x2.shape, x2.dtype),
        grid_spec=pltpu.PrefetchScalarGridSpec(
            num_scalar_prefetch=1,                     # seed -> SMEM
            grid=(m // tm,),
            in_specs=[pl.BlockSpec((tm, lane), lambda i, seed_ref: (i, 0))],
            out_specs=pl.BlockSpec((tm, lane), lambda i, seed_ref: (i, 0)),
        ),
        compiler_params=pltpu.CompilerParams(
            dimension_semantics=("parallel",),         # shard tiles across TCs
        ),
    )(seed_arr, x2)


# --------------------------------------------------------------------------
# Fallback path (non-TPU backend / interpret harness): no Mosaic hardware
# PRNG, so the noise is drawn with jax.random and the kernel only fuses the
# scale + add.  Same lane-dense tiling.
# --------------------------------------------------------------------------
def _fused_add_kernel(x_ref, n_ref, o_ref, *, mean, std):
    y = x_ref[...] + n_ref[...] * jnp.float32(std)
    if mean != 0.0:
        y = y + jnp.float32(mean)
    o_ref[...] = y.astype(o_ref.dtype)


def _add_gaussian_noise_fallback(x2, seed: int, mean: float, std: float, tm: int):
    # TODO(synk): non-TPU backends lack the Mosaic hardware PRNG
    # (prng_seed/prng_random_bits), so noise generation is hoisted out here.
    m, lane = x2.shape
    noise = jax.random.normal(jax.random.PRNGKey(seed), x2.shape, dtype=x2.dtype)
    kernel = functools.partial(_fused_add_kernel, mean=float(mean), std=float(std))
    return pl.pallas_call(
        kernel,
        out_shape=jax.ShapeDtypeStruct(x2.shape, x2.dtype),
        grid=(m // tm,),
        in_specs=[
            pl.BlockSpec((tm, lane), lambda i: (i, 0)),
            pl.BlockSpec((tm, lane), lambda i: (i, 0)),
        ],
        out_specs=pl.BlockSpec((tm, lane), lambda i: (i, 0)),
    )(x2, noise)


# --------------------------------------------------------------------------
# Public wrapper: matches AddGaussianNoise.forward semantics for any shape.
# --------------------------------------------------------------------------
def add_gaussian_noise(x, seed: int, *, mean: float = 0.0, std: float = 1.0):
    """Returns x + N(mean, std^2) noise of the same shape (float32)."""
    orig_shape = x.shape
    total = int(x.size)

    # Lane-dense slab: pad flat length to (M, _LANE) with M a multiple of the
    # row tile so every block is full-size and every store is unmasked.
    m = -(-total // _LANE)
    m = _round_up(max(m, 8), 8)
    tm = min(_MAX_ROWS, m)
    m = _round_up(m, tm)
    padded = m * _LANE

    x_flat = x.reshape(-1)
    if padded != total:
        x_flat = jnp.pad(x_flat, (0, padded - total))
    x2 = x_flat.reshape(m, _LANE)

    if jax.default_backend() == "tpu":
        out2 = _add_gaussian_noise_tpu(x2, seed, mean, std, tm)
    else:
        out2 = _add_gaussian_noise_fallback(x2, seed, mean, std, tm)

    return out2.reshape(-1)[:total].reshape(orig_shape)


if __name__ == "__main__":
    key = jax.random.PRNGKey(0)
    x = jax.random.normal(key, (2, 4, 16, 16), dtype=jnp.float32)  # NCHW

    mean, std = 0.5, 2.0
    y = add_gaussian_noise(x, seed=1234, mean=mean, std=std)
    y = jax.block_until_ready(y)

    assert y.shape == x.shape and y.dtype == x.dtype

    # Sanity check: noise = y - x should look ~ N(mean, std^2).
    noise = y - x
    emp_mean = float(jnp.mean(noise))
    emp_std = float(jnp.std(noise))
    assert abs(emp_mean - mean) < 1.0, emp_mean
    assert 0.25 * std < emp_std < 4.0 * std, emp_std

    print("KERNEL_OK")
</pallas_src>

<mosaic_0001>
module attributes {stable_mosaic.version = 11 : i64} {
  func.func @_fused_add_kernel(%arg0: i32, %arg1: memref<8x512xf32, #tpu.memory_space<vmem>>, %arg2: memref<8x512xf32, #tpu.memory_space<vmem>>, %arg3: memref<8x512xf32, #tpu.memory_space<vmem>>) attributes {dimension_semantics = [#tpu.dimension_semantics<arbitrary>], iteration_bounds = array<i64: 1>, scalar_prefetch = 0 : i64, scratch_operands = 0 : i64, tpu.core_type = #tpu.core_type<tc>, window_params = [{transform_indices = @transform_0, window_bounds = array<i64: 8, 512>}, {transform_indices = @transform_1, window_bounds = array<i64: 8, 512>}, {transform_indices = @transform_2, window_bounds = array<i64: 8, 512>}]} {
    %c0 = arith.constant 0 : index
    %c0_0 = arith.constant 0 : index
    %0 = vector.load %arg1[%c0, %c0_0] : memref<8x512xf32, #tpu.memory_space<vmem>>, vector<8x512xf32>
    %c0_1 = arith.constant 0 : index
    %c0_2 = arith.constant 0 : index
    %1 = vector.load %arg2[%c0_1, %c0_2] : memref<8x512xf32, #tpu.memory_space<vmem>>, vector<8x512xf32>
    %cst = arith.constant 2.000000e+00 : f32
    %2 = vector.broadcast %cst : f32 to vector<8x512xf32>
    %3 = arith.mulf %1, %2 : vector<8x512xf32>
    %4 = arith.addf %0, %3 : vector<8x512xf32>
    %cst_3 = arith.constant 5.000000e-01 : f32
    %5 = vector.broadcast %cst_3 : f32 to vector<8x512xf32>
    %6 = arith.addf %4, %5 : vector<8x512xf32>
    %c0_4 = arith.constant 0 : index
    %c0_5 = arith.constant 0 : index
    %7 = vector.load %arg3[%c0_4, %c0_5] : memref<8x512xf32, #tpu.memory_space<vmem>>, vector<8x512xf32>
    tpu.vector_store %arg3[%c0_4, %c0_5], %6 {strides = array<i32>} : memref<8x512xf32, #tpu.memory_space<vmem>>, vector<8x512xf32>,
    return
  }
  func.func @transform_0(%arg0: i32) -> (i32, i32) {
    %c0_i32 = arith.constant 0 : i32
    %c0_i32_0 = arith.constant 0 : i32
    return %arg0, %c0_i32 : i32, i32
  }
  func.func @transform_1(%arg0: i32) -> (i32, i32) {
    %c0_i32 = arith.constant 0 : i32
    %c0_i32_0 = arith.constant 0 : i32
    return %arg0, %c0_i32 : i32, i32
  }
  func.func @transform_2(%arg0: i32) -> (i32, i32) {
    %c0_i32 = arith.constant 0 : i32
    %c0_i32_0 = arith.constant 0 : i32
    return %arg0, %c0_i32 : i32, i32
  }
}

</mosaic_0001>

<bundles_post_ra>
// kernel: tpu_custom_call.1
= control target key start
LH: loop header
LB: loop body
LE: loop exit
PB: predicated region body
PF: predicated region fallthrough
CT: control target
= control target key end

     0   :  { %7 = vsyncpa [#allocation3], 0  ;;  %s172_s0 = inlined_call_operand.hbm [shape: f32[8,512], index: 0, kind: input, shape index: {}]   ;;  %s173_s1 = inlined_call_operand.hbm [shape: f32[8,512], index: 1, kind: input, shape index: {}]   ;;  %s174_s2 = inlined_call_operand.hbm [shape: f32[8,512], index: 2, kind: output, shape index: {}]  }
   0x1   :  { %8 = vsyncpa [#allocation6], 0 }
   0x2   :  { %9 = vsyncpa [#allocation4], 0  ;;  %s145_s9 = smov [#allocation2]   ;;  %s146_s11 = smov [#allocation5]  }
   0x3   :  { %s16_s10 = sshll.u32 %s145_s9, 4  ;;  %s26_s12 = sshll.u32 %s146_s11, 4  ;;  %s17_s10 = int_to_ptr.vmem [resolvable:$true] %s16_s10  ;;  %s27_s12 = int_to_ptr.vmem [resolvable:$true] %s26_s12 }
   0x4   :  { %s87_s13 = scalar_lea.vmem %s17_s10, 512  ;;  %p92_p1 = scmp.lt.s32.totalorder %s17_s10, %s17_s10 }
   0x5   :  { %p88_p0 = scmp.ne.s32.totalorder %s17_s10, %s87_s13  ;;  %p93_p2 = scmp.lt.s32.totalorder %s87_s13, %s87_s13 }
   0x7   :  { %p94_p3 = por %p93_p2, %p92_p1 }
   0x9   :  { %p95_p4 = pnand %p94_p3, %p88_p0 }
   0xb   :  { %98 = shalt.err (!%p95_p4)
}
   0xc   :  { %19 = dma.hbm_to_vmem [thread:$0]  %s172_s0, 512, %s17_s10, [#allocation3]  }
   0xd   :  { %s107_s16 = scalar_lea.vmem %s27_s12, 512  ;;  %p112_p6 = scmp.lt.s32.totalorder %s27_s12, %s27_s12 }
   0xe   :  { %p108_p5 = scmp.ne.s32.totalorder %s27_s12, %s107_s16  ;;  %p113_p7 = scmp.lt.s32.totalorder %s107_s16, %s107_s16 }
  0x10   :  { %p114_p8 = por %p113_p7, %p112_p6 }
  0x12   :  { %p115_p9 = pnand %p114_p8, %p108_p5 }
  0x14   :  { %118 = shalt.err (!%p115_p9)
}
  0x15   :  { %29 = dma.hbm_to_vmem [thread:$0]  %s173_s1, 512, %s27_s12, [#allocation6]  }
  0x16   :  { %139 = dma.done.wait [#allocation3], 512  }
  0x17   :  { %140 = vsyncadd [#allocation3], 4294966784 }
  0x18   :  { %141 = dma.done.wait [#allocation6], 512  }
  0x19   :  { %142 = vsyncadd [#allocation6], 4294966784  ;;  %v36_v0 = vld [vmem:[#allocation2] sm:$0xff]  ;;  %v37_v2 = vld [vmem:[#allocation2 + $0x8] sm:$0xff]  ;;  %s147_s0 = smov [#allocation7]  }
  0x1a   :  { %v40_v1 = vld [vmem:[#allocation5] sm:$0xff]  ;;  %v41_v4 = vld [vmem:[#allocation5 + $0x8] sm:$0xff]  ;;  %v38_v5 = vld [vmem:[#allocation2 + $0x10] sm:$0xff]  ;;  %s66_s1 = sshll.u32 %s147_s0, 4  ;;  %s67_s1 = int_to_ptr.vmem [resolvable:$true] %s66_s1 }
  0x1b   :  { %v44_v3 = vmul.f32 2.0, %v40_v1  ;;  %v42_v6 = vld [vmem:[#allocation5 + $0x10] sm:$0xff]  ;;  %v45_v7 = vmul.f32 2.0, %v41_v4  ;;  %v39_v9 = vld [vmem:[#allocation2 + $0x18] sm:$0xff]  ;;  %s119_s19 = scalar_lea.vmem %s67_s1, 512  ;;  %p124_p11 = scmp.lt.s32.totalorder %s67_s1, %s67_s1 }
  0x1c   :  { %v46_v8 = vmul.f32 2.0, %v42_v6  ;;  %v43_v10 = vld [vmem:[#allocation5 + $0x18] sm:$0xff]  ;;  %p120_p10 = scmp.ne.s32.totalorder %s67_s1, %s119_s19  ;;  %p125_p12 = scmp.lt.s32.totalorder %s119_s19, %s119_s19 }
  0x1d   :  { %v48_v11 = vadd.f32 %v44_v3, %v36_v0  ;;  %v47_v12 = vmul.f32 2.0, %v43_v10  ;;  %v49_v13 = vadd.f32 %v45_v7, %v37_v2 }
  0x1e   :  { %v50_v14 = vadd.f32 %v46_v8, %v38_v5  ;;  %p126_p13 = por %p125_p12, %p124_p11 }
  0x1f   :  { %v52_v15 = vadd.f32 0.5, %v48_v11  ;;  %v51_v16 = vadd.f32 %v47_v12, %v39_v9  ;;  %v53_v17 = vadd.f32 0.5, %v49_v13 }
  0x20   :  { %v54_v18 = vadd.f32 0.5, %v50_v14  ;;  %p127_p0 = pnand %p126_p13, %p120_p10 }
  0x21   :  { %56 = vst [vmem:[#allocation7] sm:$0xff] %v52_v15  ;;  %v55_v19 = vadd.f32 0.5, %v51_v16  ;;  %57 = vst [vmem:[#allocation7 + $0x8] sm:$0xff] %v53_v17 }
  0x22   :  { %58 = vst [vmem:[#allocation7 + $0x10] sm:$0xff] %v54_v18 }
  0x23   :  { %59 = vst [vmem:[#allocation7 + $0x18] sm:$0xff] %v55_v19 }
  0x24   :  { %130 = shalt.err (!%p127_p0)
}
  0x25   :  { %69 = dma.vmem_to_hbm [thread:$0]  %s67_s1, 512, %s174_s2, [#allocation4]  }
  0x26   :  { %143 = dma.done.wait [#allocation4], 512  }
  0x27   :  { %144 = vsyncadd [#allocation4], 4294966784 }
  0x28   :  { %73 = vsyncpa [#allocation3], 1 }
  0x29   :  { %74 = vsyncpa [#allocation6], 1 }
  0x2a   :  { %75 = vsyncpa [#allocation4], 1 }

</bundles_post_ra>
